<compile_context>
chip_gen: v7x
topology: tpu7x:2x2x1
jax: 0.10.0
libtpu: 0.0.40
codegen_flags: <defaults>
</compile_context>

<pallas_src>
import functools

import jax
import jax.numpy as jnp
from jax.experimental import pallas as pl
from jax.experimental.pallas import tpu as pltpu

LANE = 128       # TPU lane width (last-dim tiling)
BATCH_ALIGN = 8  # f32 sublane tiling of the batch axis


def _round_up(n, m):
    return ((n + m - 1) // m) * m


def policy_net_kernel(x_ref, w1_ref, b1_ref, w2_ref, b2_ref, out_ref):
    # fc1 + ReLU (f32 MXU operands, f32 accumulation).
    h = jnp.dot(x_ref[...], w1_ref[...], preferred_element_type=jnp.float32)
    h = jnp.maximum(h + b1_ref[...], 0.0)          # b1 (1, hidden) broadcasts over rows

    # fc2 over the lane-padded (128-wide) action axis.
    logits = jnp.dot(h, w2_ref[...], preferred_element_type=jnp.float32)
    logits = logits + b2_ref[...]                  # padded lanes carry a -1e30 bias

    # Numerically stable softmax over the padded action axis. Padded lanes have
    # logits ~ -1e30, so exp() underflows to exactly 0 and they do not perturb
    # the normalization over the valid actions. All reductions are per-row, so
    # garbage rows from a partial (masked) batch block never contaminate valid
    # rows.
    m = jnp.max(logits, axis=-1, keepdims=True)
    e = jnp.exp(logits - m)
    denom = jnp.sum(e, axis=-1, keepdims=True)

    # EUP approximate reciprocal + one Newton step (~f32 accuracy, no VALU divide).
    r = pl.reciprocal(denom, approx=True)
    r = r * (2.0 - denom * r)

    probs = e * r
    # Store only the valid action lanes -> narrow, contiguous HBM writeback.
    out_ref[...] = probs[:, : out_ref.shape[-1]].astype(out_ref.dtype)


@functools.partial(jax.jit, static_argnames=("tile_b",))
def policy_net_forward(x, w1, b1, w2, b2, *, tile_b=4096):
    """Fused PolicyNet forward.

    x : (B, state_dim) float32
    w1: (state_dim, hidden)   -- transposed w.r.t. PyTorch's fc1.weight
    b1: (hidden,)
    w2: (hidden, action_dim)  -- transposed w.r.t. PyTorch's fc2.weight
    b2: (action_dim,)
    returns (B, action_dim) float32 softmax probabilities.
    """
    B, state_dim = x.shape
    hidden = w1.shape[1]
    action_dim = w2.shape[1]

    a_pad = _round_up(max(action_dim, LANE), LANE)   # MXU-native fc2 width

    # Batch tile: large enough to amortize the per-grid-step pipeline overhead,
    # capped near ceil(B/4) so large batches keep >= ~4 grid steps (lets v7x's
    # two TensorCores shard the "parallel" batch axis). Always sublane-aligned.
    tb = min(tile_b, _round_up(pl.cdiv(B, 4), BATCH_ALIGN))
    tb = max(BATCH_ALIGN, _round_up(tb, BATCH_ALIGN))
    grid = (pl.cdiv(B, tb),)

    # One-time tiny layout plumbing on the weights (a few KiB of traffic).
    b1_r = b1.reshape(1, hidden).astype(jnp.float32)
    w2_p = jnp.zeros((hidden, a_pad), jnp.float32).at[:, :action_dim].set(
        w2.astype(jnp.float32))
    b2_p = jnp.full((1, a_pad), -1e30, jnp.float32).at[0, :action_dim].set(
        b2.astype(jnp.float32))

    return pl.pallas_call(
        policy_net_kernel,
        out_shape=jax.ShapeDtypeStruct((B, action_dim), jnp.float32),
        grid=grid,
        in_specs=[
            pl.BlockSpec((tb, state_dim), lambda i: (i, 0)),       # x streamed over batch
            pl.BlockSpec((state_dim, hidden), lambda i: (0, 0)),   # weights stay resident
            pl.BlockSpec((1, hidden), lambda i: (0, 0)),
            pl.BlockSpec((hidden, a_pad), lambda i: (0, 0)),
            pl.BlockSpec((1, a_pad), lambda i: (0, 0)),
        ],
        out_specs=pl.BlockSpec((tb, action_dim), lambda i: (i, 0)),
        compiler_params=pltpu.CompilerParams(
            dimension_semantics=("parallel",),
        ),
    )(x.astype(jnp.float32), w1.astype(jnp.float32), b1_r, w2_p, b2_p)


def init_params(key, state_dim, hidden_dim, action_dim):
    """Deterministic init mimicking torch.nn.Linear (uniform +-1/sqrt(fan_in)).
    Weights stored already transposed: (in_features, out_features)."""
    k1, k2, k3, k4 = jax.random.split(key, 4)
    lim1 = 1.0 / jnp.sqrt(state_dim)
    lim2 = 1.0 / jnp.sqrt(hidden_dim)
    w1 = jax.random.uniform(k1, (state_dim, hidden_dim), jnp.float32, -lim1, lim1)
    b1 = jax.random.uniform(k2, (hidden_dim,), jnp.float32, -lim1, lim1)
    w2 = jax.random.uniform(k3, (hidden_dim, action_dim), jnp.float32, -lim2, lim2)
    b2 = jax.random.uniform(k4, (action_dim,), jnp.float32, -lim2, lim2)
    return w1, b1, w2, b2


def reference_forward_f32(x, w1, b1, w2, b2):
    h = jnp.maximum(x @ w1 + b1, 0.0)
    return jax.nn.softmax(h @ w2 + b2, axis=1)


if __name__ == "__main__":
    key = jax.random.PRNGKey(0)
    kx, kx2, kp = jax.random.split(key, 3)

    state_dim, hidden_dim, action_dim = 8, 32, 4
    w1, b1, w2, b2 = init_params(kp, state_dim, hidden_dim, action_dim)

    # --- case 1: tiny batch, single grid step with a partial (masked) block ---
    batch = 4
    x = jax.random.normal(kx, (batch, state_dim), dtype=jnp.float32)
    out = jax.block_until_ready(policy_net_forward(x, w1, b1, w2, b2))
    assert out.shape == (batch, action_dim)
    ref = reference_forward_f32(x, w1, b1, w2, b2)
    assert jnp.allclose(out, ref, atol=1e-2, rtol=1e-2)
    assert jnp.allclose(jnp.sum(out, axis=1), jnp.ones((batch,)), atol=1e-5)

    # --- case 2: multi-step grid + ragged final block (40 rows, tile of 16) ---
    batch2 = 40
    x2 = jax.random.normal(kx2, (batch2, state_dim), dtype=jnp.float32)
    out2 = jax.block_until_ready(
        policy_net_forward(x2, w1, b1, w2, b2, tile_b=16))
    assert out2.shape == (batch2, action_dim)
    ref2 = reference_forward_f32(x2, w1, b1, w2, b2)
    assert jnp.allclose(out2, ref2, atol=1e-2, rtol=1e-2)
    assert jnp.allclose(jnp.sum(out2, axis=1), jnp.ones((batch2,)), atol=1e-5)

    print("KERNEL_OK")
</pallas_src>

<mosaic_0001>
module attributes {stable_mosaic.version = 11 : i64} {
  func.func @policy_net_kernel(%arg0: i32, %arg1: memref<8x8xf32, #tpu.memory_space<vmem>>, %arg2: memref<8x32xf32, #tpu.memory_space<vmem>>, %arg3: memref<1x32xf32, #tpu.memory_space<vmem>>, %arg4: memref<32x128xf32, #tpu.memory_space<vmem>>, %arg5: memref<1x128xf32, #tpu.memory_space<vmem>>, %arg6: memref<8x4xf32, #tpu.memory_space<vmem>>) attributes {dimension_semantics = [#tpu.dimension_semantics<parallel>], iteration_bounds = array<i64: 1>, scalar_prefetch = 0 : i64, scratch_operands = 0 : i64, tpu.core_type = #tpu.core_type<tc>, window_params = [{transform_indices = @transform_0, window_bounds = array<i64: 8, 8>}, {pipeline_mode = #tpu.pipeline_mode<synchronous>, transform_indices = @transform_1, window_bounds = array<i64: 8, 32>}, {pipeline_mode = #tpu.pipeline_mode<synchronous>, transform_indices = @transform_2, window_bounds = array<i64: 1, 32>}, {pipeline_mode = #tpu.pipeline_mode<synchronous>, transform_indices = @transform_3, window_bounds = array<i64: 32, 128>}, {pipeline_mode = #tpu.pipeline_mode<synchronous>, transform_indices = @transform_4, window_bounds = array<i64: 1, 128>}, {transform_indices = @transform_5, window_bounds = array<i64: 8, 4>}]} {
    %c0 = arith.constant 0 : index
    %c0_0 = arith.constant 0 : index
    %0 = vector.load %arg1[%c0, %c0_0] : memref<8x8xf32, #tpu.memory_space<vmem>>, vector<8x8xf32>
    %c0_1 = arith.constant 0 : index
    %c0_2 = arith.constant 0 : index
    %1 = vector.load %arg2[%c0_1, %c0_2] : memref<8x32xf32, #tpu.memory_space<vmem>>, vector<8x32xf32>
    %cst = arith.constant dense<0.000000e+00> : vector<8x32xf32>
    %2 = tpu.matmul %0, %1, %cst {dimension_numbers = #tpu.dot_dimension_numbers<[1], [0], [0], [1], [0, 0, 1, 1], [], []>} : vector<8x8xf32>, vector<8x32xf32>, vector<8x32xf32> -> vector<8x32xf32>
    %c0_3 = arith.constant 0 : index
    %c0_4 = arith.constant 0 : index
    %3 = vector.load %arg3[%c0_3, %c0_4] : memref<1x32xf32, #tpu.memory_space<vmem>>, vector<1x32xf32>
    %4 = vector.broadcast %3 : vector<1x32xf32> to vector<8x32xf32>
    %5 = arith.addf %2, %4 : vector<8x32xf32>
    %cst_5 = arith.constant 0.000000e+00 : f32
    %6 = vector.broadcast %cst_5 : f32 to vector<8x32xf32>
    %7 = arith.maximumf %5, %6 : vector<8x32xf32>
    %c0_6 = arith.constant 0 : index
    %c0_7 = arith.constant 0 : index
    %8 = vector.load %arg4[%c0_6, %c0_7] : memref<32x128xf32, #tpu.memory_space<vmem>>, vector<32x128xf32>
    %cst_8 = arith.constant dense<0.000000e+00> : vector<8x128xf32>
    %9 = tpu.matmul %7, %8, %cst_8 {dimension_numbers = #tpu.dot_dimension_numbers<[1], [0], [0], [1], [0, 0, 1, 1], [], []>} : vector<8x32xf32>, vector<32x128xf32>, vector<8x128xf32> -> vector<8x128xf32>
    %c0_9 = arith.constant 0 : index
    %c0_10 = arith.constant 0 : index
    %10 = vector.load %arg5[%c0_9, %c0_10] : memref<1x128xf32, #tpu.memory_space<vmem>>, vector<1x128xf32>
    %11 = vector.broadcast %10 : vector<1x128xf32> to vector<8x128xf32>
    %12 = arith.addf %9, %11 : vector<8x128xf32>
    %cst_11 = arith.constant dense<0xFF800000> : vector<8xf32>
    %13 = vector.multi_reduction <maximumf>, %12, %cst_11 [1] : vector<8x128xf32> to vector<8xf32>
    %14 = vector.shape_cast %13 : vector<8xf32> to vector<8x1xf32>
    %15 = vector.broadcast %14 : vector<8x1xf32> to vector<8x128xf32>
    %16 = arith.subf %12, %15 : vector<8x128xf32>
    %17 = math.exp %16 : vector<8x128xf32>
    %cst_12 = arith.constant dense<0.000000e+00> : vector<8xf32>
    %18 = vector.multi_reduction <add>, %17, %cst_12 [1] : vector<8x128xf32> to vector<8xf32>
    %19 = vector.shape_cast %18 : vector<8xf32> to vector<8x1xf32>
    %20 = tpu.reciprocal %19 {approx = true} : vector<8x1xf32> -> vector<8x1xf32>
    %21 = arith.mulf %19, %20 : vector<8x1xf32>
    %cst_13 = arith.constant 2.000000e+00 : f32
    %22 = vector.broadcast %cst_13 : f32 to vector<8x1xf32>
    %23 = arith.subf %22, %21 : vector<8x1xf32>
    %24 = arith.mulf %20, %23 : vector<8x1xf32>
    %25 = vector.broadcast %24 : vector<8x1xf32> to vector<8x128xf32>
    %26 = arith.mulf %17, %25 : vector<8x128xf32>
    %27 = vector.extract_strided_slice %26 {offsets = [0, 0], sizes = [8, 4], strides = [1, 1]} : vector<8x128xf32> to vector<8x4xf32>
    %c0_14 = arith.constant 0 : index
    %c0_15 = arith.constant 0 : index
    %28 = vector.load %arg6[%c0_14, %c0_15] : memref<8x4xf32, #tpu.memory_space<vmem>>, vector<8x4xf32>
    tpu.vector_store %arg6[%c0_14, %c0_15], %27 {strides = array<i32>} : memref<8x4xf32, #tpu.memory_space<vmem>>, vector<8x4xf32>,
    return
  }
  func.func @transform_0(%arg0: i32) -> (i32, i32) {
    %c0_i32 = arith.constant 0 : i32
    %c0_i32_0 = arith.constant 0 : i32
    return %arg0, %c0_i32 : i32, i32
  }
  func.func @transform_1(%arg0: i32) -> (i32, i32) {
    %c0_i32 = arith.constant 0 : i32
    %c0_i32_0 = arith.constant 0 : i32
    %c0_i32_1 = arith.constant 0 : i32
    return %c0_i32, %c0_i32_0 : i32, i32
  }
  func.func @transform_2(%arg0: i32) -> (i32, i32) {
    %c0_i32 = arith.constant 0 : i32
    %c0_i32_0 = arith.constant 0 : i32
    %c0_i32_1 = arith.constant 0 : i32
    return %c0_i32, %c0_i32_0 : i32, i32
  }
  func.func @transform_3(%arg0: i32) -> (i32, i32) {
    %c0_i32 = arith.constant 0 : i32
    %c0_i32_0 = arith.constant 0 : i32
    %c0_i32_1 = arith.constant 0 : i32
    return %c0_i32, %c0_i32_0 : i32, i32
  }
  func.func @transform_4(%arg0: i32) -> (i32, i32) {
    %c0_i32 = arith.constant 0 : i32
    %c0_i32_0 = arith.constant 0 : i32
    %c0_i32_1 = arith.constant 0 : i32
    return %c0_i32, %c0_i32_0 : i32, i32
  }
  func.func @transform_5(%arg0: i32) -> (i32, i32) {
    %c0_i32 = arith.constant 0 : i32
    %c0_i32_0 = arith.constant 0 : i32
    return %arg0, %c0_i32 : i32, i32
  }
}

</mosaic_0001>

<bundles_post_ra>
// kernel: policy_net_forward.1
= control target key start
LH: loop header
LB: loop body
LE: loop exit
PB: predicated region body
PF: predicated region fallthrough
CT: control target
= control target key end

     0   :  { %10 = vsyncpa [#allocation3], 0  ;;  %v287_v2 = vmov 0.0   ;;  %vm288_vm0 = vmmov 0   ;;  %vm30_vm1 = vcmask 64512   ;;  %v289_v5 = vmov 0.0|0.0   ;;  %s359_s0 = inlined_call_operand.vmem [shape: f32[4,8], index: 0, kind: input, shape index: {}]   ;;  %s360_s1 = inlined_call_operand.vmem [shape: f32[8,32], index: 1, kind: input, shape index: {}]   ;;  %s361_s2 = inlined_call_operand.vmem [shape: f32[1,32], index: 2, kind: input, shape index: {}]   ;;  %s362_s3 = inlined_call_operand.vmem [shape: f32[32,128], index: 3, kind: input, shape index: {}]   ;;  %s363_s4 = inlined_call_operand.vmem [shape: f32[1,128], index: 4, kind: input, shape index: {}]   ;;  %s364_s5 = inlined_call_operand.hbm [shape: f32[4,4], index: 5, kind: output, shape index: {}]  }
   0x1   :  { %v22_v0 = vld [vmem:[%s360_s1] sm:$0xff]  ;;  %231 = vmatprep.subr.mxu0 %v287_v2  ;;  %233 = vmatprep.mubr.msk.f32.mxu0 %vm288_vm0, %v287_v2  ;;  %v106_v4 = vld [vmem:[%s362_s3 + $0x8] sm:$0xff]  ;;  %v107_v7 = vld [vmem:[%s362_s3 + $0x10] sm:$0xff]  ;;  %vm116_vm2 = vcmask 261120   ;;  %vm202_vm3 = vcmask 31744  }
   0x2   :  { %v21_v1 = vld [vmem:[%s359_s0] sm:$0xff]  ;;  %232 = vmatpush3.msra.mxu0 %v22_v0  ;;  %247 = vmatprep.subr.bf16.mxu1 %v289_v5  ;;  %v108_v8 = vld [vmem:[%s362_s3 + $0x18] sm:$0xff] }
   0x3   :  { %v105_v3 = vld [vmem:[%s362_s3] sm:$0xff]  ;;  %234 = vmatmul.mubr.msk.f32.vlgmr.msra.gmra.mrb[0].mxu0 %vm30_vm1, %v21_v1  ;;  %244 = vmatprep.mubr.msk.f32.mxu1 %vm288_vm0, %v287_v2  ;;  %v251_v9 = vpack.c.bf16 %v108_v8, %v107_v7 }
   0x4   :  { %v248_v6 = vpack.c.bf16 %v106_v4, %v105_v3  ;;  %v220_v10 = vld [vmem:[%s361_s2] ss:$0 sm:$0xff] }
   0x5   :  { %v222_v15 = vld [vmem:[%s363_s4] ss:$0 sm:$0xff] }
   0x6   :  { %249 = vmatpush3.bf16.msra.mxu1 %v248_v6 }
   0x7   :  { %250 = vmatprep.subr.bf16.mxu1 %v289_v5 }
   0xa   :  { %252 = vmatpush3.bf16.msra.mxu1 %v251_v9 }
  0xd6   :  { %v100_v11 = vpop.f32.mrb[0].mxu0 }
  0xd7   :  { %v101_v12 = vadd.f32 %v220_v10, %v100_v11  ;;  %v235_v13 = vpop.f32.mrb[1].mxu0 }
  0xd9   :  { %v104_v14 = vmax.f32 %v101_v12, 0.0 }
  0xdb   :  { %245 = vmatmul.mubr.msk.f32.vlgmr.msra.gmra.mrb[0].mxu1 %vm116_vm2, %v104_v14 }
 0x1ae   :  { %v186_v16 = vpop.f32.mrb[0].mxu1 }
 0x1af   :  { %v187_v17 = vadd.f32 %v222_v15, %v186_v16  ;;  %v246_v18 = vpop.f32.mrb[1].mxu1 }
 0x1b1   :  { %190 = vmax.xlane.f32.xlu0 %v187_v17 }
 0x23e   :  { %v191_v19 = vpop.xlane.xlu0 %190 }
 0x23f   :  { %v192_v20 = vsub.f32 %v187_v17, %v191_v19 }
 0x241   :  { %v193_v21 = vmul.f32 1.442695, %v192_v20 }
 0x243   :  { %259 = vpow2.f32 %v193_v21 }
 0x24d   :  { %v260_v22 = vpop.eup %259 }
 0x24e   :  { %195 = vadd.xlane.f32.xlu0 %v260_v22 }
 0x2db   :  { %v196_v23 = vpop.xlane.xlu0 %195 }
 0x2dc   :  { %261 = vrcp.f32 %v196_v23 }
 0x2e6   :  { %v262_v24 = vpop.eup %261 }
 0x2e7   :  { %v198_v25 = vmul.f32 %v262_v24, %v196_v23 }
 0x2e9   :  { %v199_v26 = vsub.f32 2.0, %v198_v25 }
 0x2eb   :  { %v200_v27 = vmul.f32 %v262_v24, %v199_v26 }
 0x2ed   :  { %v201_v28 = vmul.f32 %v260_v22, %v200_v27 }
 0x2ef   :  { %203 = vst.msk [vmem:[#allocation2] sm:$0xff] %vm202_vm3, %v201_v28 }
 0x2f0   :  { %208 = vsyncadd [#allocation3], 64  ;;  %s290_s2 = smov [#allocation2]  }
 0x2f1   :  { %s209_s3 = sshll.u32 %s290_s2, 4  ;;  %s210_s3 = int_to_ptr.vmem [resolvable:$true] %s209_s3 }
 0x2f2   :  { %s263_s4 = scalar_lea.vmem %s210_s3, 64  ;;  %s267_s7 = scalar_lea.vmem %s210_s3, 128 }
 0x2f3   :  { %p264_p0 = scmp.ne.s32.totalorder %s210_s3, %s263_s4  ;;  %p268_p1 = scmp.lt.s32.totalorder %s210_s3, %s210_s3 }
 0x2f4   :  { %p269_p2 = scmp.lt.s32.totalorder %s267_s7, %s263_s4 }
 0x2f6   :  { %p270_p3 = por %p269_p2, %p268_p1 }
 0x2f8   :  { %p271_p4 = pnand %p270_p3, %p264_p0 }
 0x2fa   :  { %274 = shalt.err (!%p271_p4)
}
 0x2fb   :  { %s275_s10 = scalar_lea.hbm %s364_s5, 64 }
 0x2fc   :  { %p276_p5 = scmp.ne.s32.totalorder %s364_s5, %s275_s10  ;;  %p279_p6 = scmp.lt.u32.totalorder %s275_s10, %s364_s5 }
 0x2fe   :  { %p281_p7 = pnand %p279_p6, %p276_p5 }
 0x300   :  { %284 = shalt.err (!%p281_p7)
}
 0x301   :  { %s291_s15 = smov 64   ;;  %s292_s16 = smov 4  }
 0x302   :  { %215 = dma.vmem_to_hbm [thread:$0]  %s210_s3, 64, %s364_s5, [#allocation3], %s291_s15, %s291_s15, %s292_s16  }
 0x303   :  { %285 = dma.done.wait [#allocation3], 128  }
 0x304   :  { %286 = vsyncadd [#allocation3], 4294967168 }
 0x305   :  { %219 = vsyncpa [#allocation3], 1 }

</bundles_post_ra>
